<compile_context>
chip_gen: v6e
topology: v6e:2x2x1
jax: 0.10.0
libtpu: 0.0.40
codegen_flags: <defaults>
</compile_context>

<pallas_src>
import functools

import jax
import jax.numpy as jnp
from jax.experimental import pallas as pl
from jax.experimental.pallas import tpu as pltpu


_VMEM_LIMIT_BYTES = 32 * 1024 * 1024  # explicit scoped-VMEM budget, safe on v5e/v6e/v7x
_DEFAULT_BLOCK_ROWS = 8192            # ~1 MiB/operand tile at K=32 f32 (near roofline)


def _round_up(x, m):
    return ((x + m - 1) // m) * m


def _pick_tile(n, block_rows):
    """Row-tile size: multiple of 8 (f32 sublane), capped by requested block size."""
    return _round_up(min(int(block_rows), _round_up(n, 8)), 8)


# ----------------------------------------------------------------------------
# Pallas kernels
# ----------------------------------------------------------------------------
def _gumbel_softmax_kernel(h_ref, y_ref, o_ref, *, mu, beta, inv_tau, noise_is_gumbel):
    """out = softmax((log_softmax(h, -1) + g) * (1/tau), -1)."""
    h = h_ref[...].astype(jnp.float32)

    # Fused log-softmax: one exp + one per-row log instead of the
    # exp -> divide -> per-element log round-trip (also avoids log(0) = -inf
    # when the first softmax underflows for rows with large logit spread).
    m = jnp.max(h, axis=-1, keepdims=True)
    hs = h - m
    logp = hs - jnp.log(jnp.sum(jnp.exp(hs), axis=-1, keepdims=True))

    if noise_is_gumbel:
        g = y_ref[...].astype(jnp.float32)
    else:
        # inverse_gumbel_cdf(y + 1e-25, mu, beta); clamp away from 1.0 so
        # -log(y) never hits exactly 0 (+inf -> NaN in the second softmax).
        y = jnp.clip(y_ref[...].astype(jnp.float32) + 1e-25, 1e-25, 1.0 - 1e-7)
        g = mu - beta * jnp.log(-jnp.log(y))

    x = (logp + g) * inv_tau  # constant-multiply instead of per-element divide

    m2 = jnp.max(x, axis=-1, keepdims=True)
    e2 = jnp.exp(x - m2)
    denom = jnp.sum(e2, axis=-1, keepdims=True)
    # Per-row approx reciprocal -> EUP vrcp slot; softmax tolerates the precision.
    o_ref[...] = (e2 * pl.reciprocal(denom, approx=True)).astype(o_ref.dtype)


def _lalign_kernel(x_ref, y_ref, o_ref, *, alpha, inv_n):
    """Accumulate sum_i ||x_i - y_i||^alpha over row tiles; finalize as mean."""
    i = pl.program_id(0)

    @pl.when(i == 0)
    def _():
        o_ref[...] = jnp.zeros_like(o_ref)

    d = x_ref[...].astype(jnp.float32) - y_ref[...].astype(jnp.float32)
    sq = jnp.sum(d * d, axis=-1, keepdims=True)      # (TN, 1) squared row norms
    if alpha == 2.0:
        pw = sq                                      # skip sqrt + pow entirely
    else:
        pw = sq ** (alpha * 0.5)                     # ||.||^a == (||.||^2)^(a/2)
    o_ref[...] += jnp.sum(pw, axis=0, keepdims=True)  # (1, 1) running sum

    @pl.when(i == pl.num_programs(0) - 1)
    def _():
        o_ref[...] = o_ref[...] * inv_n


# ----------------------------------------------------------------------------
# Wrappers
# ----------------------------------------------------------------------------
def gumbel_softmax_sampling(h, uniform_noise, mu=0.0, beta=1.0, tau=0.1,
                            *, noise_is_gumbel=False,
                            block_rows=_DEFAULT_BLOCK_ROWS):
    n, k = h.shape
    tn = _pick_tile(n, block_rows)
    n_pad = _round_up(n, tn)
    if n_pad != n:
        h = jnp.pad(h, ((0, n_pad - n), (0, 0)))
        uniform_noise = jnp.pad(uniform_noise, ((0, n_pad - n), (0, 0)),
                                constant_values=0.5)

    out = pl.pallas_call(
        functools.partial(
            _gumbel_softmax_kernel, mu=float(mu), beta=float(beta),
            inv_tau=1.0 / float(tau), noise_is_gumbel=bool(noise_is_gumbel)),
        out_shape=jax.ShapeDtypeStruct((n_pad, k), h.dtype),
        grid=(n_pad // tn,),
        in_specs=[pl.BlockSpec((tn, k), lambda i: (i, 0)),
                  pl.BlockSpec((tn, k), lambda i: (i, 0))],
        out_specs=pl.BlockSpec((tn, k), lambda i: (i, 0)),
        compiler_params=pltpu.CompilerParams(
            dimension_semantics=("parallel",),        # shards rows across v7x TCs
            vmem_limit_bytes=_VMEM_LIMIT_BYTES),
    )(h, uniform_noise)
    return out[:n] if n_pad != n else out


def lalign(x, y, alpha=2, *, block_rows=_DEFAULT_BLOCK_ROWS):
    n, k = x.shape
    tn = _pick_tile(n, block_rows)
    n_pad = _round_up(n, tn)
    if n_pad != n:
        # Zero-padded rows give x - y == 0 and contribute 0 to the sum;
        # the mean divides by the true n.
        x = jnp.pad(x, ((0, n_pad - n), (0, 0)))
        y = jnp.pad(y, ((0, n_pad - n), (0, 0)))

    out = pl.pallas_call(
        functools.partial(_lalign_kernel, alpha=float(alpha), inv_n=1.0 / float(n)),
        out_shape=jax.ShapeDtypeStruct((1, 1), jnp.float32),
        grid=(n_pad // tn,),
        in_specs=[pl.BlockSpec((tn, k), lambda i: (i, 0)),
                  pl.BlockSpec((tn, k), lambda i: (i, 0))],
        # Resident (1,1) accumulator block across the reduction axis.
        out_specs=pl.BlockSpec((1, 1), lambda i: (0, 0)),
        compiler_params=pltpu.CompilerParams(
            dimension_semantics=("arbitrary",),       # reduction axis
            vmem_limit_bytes=_VMEM_LIMIT_BYTES),
    )(x, y)
    return out[0, 0]


# ----------------------------------------------------------------------------
# BaseModel (JAX side)
# ----------------------------------------------------------------------------
class Config:
    embedding_size = 32
    max_his_len = 8
    l2_reg = 1e-4


class BaseModelJax:
    def __init__(self, config):
        self.phase = ""
        self.embedding_size = config.embedding_size
        self.max_his_len = config.max_his_len
        self.l2_reg = config.l2_reg
        # TODO(synk): embedding_layer / BCE loss are only used by subclass-defined
        # calculate_loss; forward() here has no parameters.
        # TODO(synk): lunif (torch.pdist O(N^2) pairwise distances) not ported.

    def forward(self, inputs):
        # Faithful to the PyTorch forward: no tensor compute.
        out_dict = {}
        out_dict["scores"] = 0
        out_dict["summary_dic"] = {}
        out_dict["embed_hook"] = {}
        return out_dict

    def predict(self, inputs):
        out = self.forward(inputs)
        return out["scores"], out["embed_hook"]

    def set_phase(self, phase):
        self.phase = phase

    def lalign(self, x, y, alpha=2, **kw):
        return lalign(x, y, alpha=alpha, **kw)

    def gumbel_softmax_sampling(self, h, noise, mu=0.0, beta=1.0, tau=0.1, **kw):
        return gumbel_softmax_sampling(h, noise, mu=mu, beta=beta, tau=tau, **kw)


# ----------------------------------------------------------------------------
if __name__ == "__main__":
    cfg = Config()
    model = BaseModelJax(cfg)

    key = jax.random.PRNGKey(0)
    k_h, k_noise, k_x, k_y = jax.random.split(key, 4)

    # Small shapes; N chosen non-multiple of the tile to exercise padding, and
    # block_rows forced small to exercise the multi-tile pipelined grid.
    N, K = 50, cfg.embedding_size
    BLOCK = 16
    h = jax.random.normal(k_h, (N, K), dtype=jnp.float32)
    noise = jax.random.uniform(k_noise, (N, K), dtype=jnp.float32)
    xa = jax.random.normal(k_x, (N, K), dtype=jnp.float32)
    yb = jax.random.normal(k_y, (N, K), dtype=jnp.float32)

    # forward pass (trivial, matches PyTorch exactly)
    out = model.forward({"dummy": h})
    assert out["scores"] == 0 and out["summary_dic"] == {} and out["embed_hook"] == {}

    # Pallas hot-path kernels
    gs = model.gumbel_softmax_sampling(h, noise, mu=0.0, beta=1.0, tau=0.1,
                                       block_rows=BLOCK)
    al = model.lalign(xa, yb, alpha=2, block_rows=BLOCK)

    gs = jax.block_until_ready(gs)
    al = jax.block_until_ready(al)

    # Pure-JAX references (original, unfused formulation from the PyTorch code)
    def ref_gumbel(hh, yy, mu, beta, tau):
        p = jax.nn.softmax(hh, axis=-1)
        g = mu - beta * jnp.log(-jnp.log(yy + 1e-25))
        return jax.nn.softmax((jnp.log(p) + g) / tau, axis=-1)

    gs_ref = ref_gumbel(h, noise, 0.0, 1.0, 0.1)
    al_ref = jnp.mean(jnp.linalg.norm(xa - yb, axis=1) ** 2)

    assert gs.shape == (N, K)
    row_sums = jnp.sum(gs, axis=-1)
    assert bool(jnp.all(jnp.abs(row_sums - 1.0) < 5e-3))      # approx-recip tolerance
    assert bool(jnp.max(jnp.abs(gs - gs_ref)) < 5e-3)
    assert bool(jnp.isfinite(al))
    assert bool(jnp.abs(al - al_ref) < 1e-3 * (1.0 + jnp.abs(al_ref)))

    print("KERNEL_OK")
</pallas_src>

<mosaic_0001>
module attributes {stable_mosaic.version = 11 : i64} {
  func.func @_gumbel_softmax_kernel(%arg0: i32, %arg1: memref<16x32xf32, #tpu.memory_space<vmem>>, %arg2: memref<16x32xf32, #tpu.memory_space<vmem>>, %arg3: memref<16x32xf32, #tpu.memory_space<vmem>>) attributes {dimension_semantics = [#tpu.dimension_semantics<parallel>], iteration_bounds = array<i64: 4>, scalar_prefetch = 0 : i64, scratch_operands = 0 : i64, tpu.core_type = #tpu.core_type<tc>, window_params = [{transform_indices = @transform_0, window_bounds = array<i64: 16, 32>}, {transform_indices = @transform_1, window_bounds = array<i64: 16, 32>}, {transform_indices = @transform_2, window_bounds = array<i64: 16, 32>}]} {
    %c0 = arith.constant 0 : index
    %c0_0 = arith.constant 0 : index
    %0 = vector.load %arg1[%c0, %c0_0] : memref<16x32xf32, #tpu.memory_space<vmem>>, vector<16x32xf32>
    %cst = arith.constant dense<0xFF800000> : vector<16xf32>
    %1 = vector.multi_reduction <maximumf>, %0, %cst [1] : vector<16x32xf32> to vector<16xf32>
    %2 = vector.shape_cast %1 : vector<16xf32> to vector<16x1xf32>
    %3 = vector.broadcast %2 : vector<16x1xf32> to vector<16x32xf32>
    %4 = arith.subf %0, %3 : vector<16x32xf32>
    %5 = math.exp %4 : vector<16x32xf32>
    %cst_1 = arith.constant dense<0.000000e+00> : vector<16xf32>
    %6 = vector.multi_reduction <add>, %5, %cst_1 [1] : vector<16x32xf32> to vector<16xf32>
    %7 = vector.shape_cast %6 : vector<16xf32> to vector<16x1xf32>
    %8 = math.log %7 : vector<16x1xf32>
    %9 = vector.broadcast %8 : vector<16x1xf32> to vector<16x32xf32>
    %10 = arith.subf %4, %9 : vector<16x32xf32>
    %c0_2 = arith.constant 0 : index
    %c0_3 = arith.constant 0 : index
    %11 = vector.load %arg2[%c0_2, %c0_3] : memref<16x32xf32, #tpu.memory_space<vmem>>, vector<16x32xf32>
    %cst_4 = arith.constant 1.000000e-25 : f32
    %12 = vector.broadcast %cst_4 : f32 to vector<16x32xf32>
    %13 = arith.addf %11, %12 : vector<16x32xf32>
    %cst_5 = arith.constant 1.000000e-25 : f32
    %cst_6 = arith.constant 0.99999988 : f32
    %14 = vector.broadcast %cst_5 : f32 to vector<16x32xf32>
    %15 = arith.maximumf %14, %13 : vector<16x32xf32>
    %16 = vector.broadcast %cst_6 : f32 to vector<16x32xf32>
    %17 = arith.minimumf %16, %15 : vector<16x32xf32>
    %18 = math.log %17 : vector<16x32xf32>
    %cst_7 = arith.constant 0.000000e+00 : f32
    %19 = vector.broadcast %cst_7 : f32 to vector<16x32xf32>
    %20 = arith.subf %19, %18 : vector<16x32xf32>
    %21 = math.log %20 : vector<16x32xf32>
    %cst_8 = arith.constant 1.000000e+00 : f32
    %22 = vector.broadcast %cst_8 : f32 to vector<16x32xf32>
    %23 = arith.mulf %22, %21 : vector<16x32xf32>
    %cst_9 = arith.constant 0.000000e+00 : f32
    %24 = vector.broadcast %cst_9 : f32 to vector<16x32xf32>
    %25 = arith.subf %24, %23 : vector<16x32xf32>
    %26 = arith.addf %10, %25 : vector<16x32xf32>
    %cst_10 = arith.constant 1.000000e+01 : f32
    %27 = vector.broadcast %cst_10 : f32 to vector<16x32xf32>
    %28 = arith.mulf %26, %27 : vector<16x32xf32>
    %cst_11 = arith.constant dense<0xFF800000> : vector<16xf32>
    %29 = vector.multi_reduction <maximumf>, %28, %cst_11 [1] : vector<16x32xf32> to vector<16xf32>
    %30 = vector.shape_cast %29 : vector<16xf32> to vector<16x1xf32>
    %31 = vector.broadcast %30 : vector<16x1xf32> to vector<16x32xf32>
    %32 = arith.subf %28, %31 : vector<16x32xf32>
    %33 = math.exp %32 : vector<16x32xf32>
    %cst_12 = arith.constant dense<0.000000e+00> : vector<16xf32>
    %34 = vector.multi_reduction <add>, %33, %cst_12 [1] : vector<16x32xf32> to vector<16xf32>
    %35 = vector.shape_cast %34 : vector<16xf32> to vector<16x1xf32>
    %36 = tpu.reciprocal %35 {approx = true} : vector<16x1xf32> -> vector<16x1xf32>
    %37 = vector.broadcast %36 : vector<16x1xf32> to vector<16x32xf32>
    %38 = arith.mulf %33, %37 : vector<16x32xf32>
    %c0_13 = arith.constant 0 : index
    %c0_14 = arith.constant 0 : index
    %39 = vector.load %arg3[%c0_13, %c0_14] : memref<16x32xf32, #tpu.memory_space<vmem>>, vector<16x32xf32>
    tpu.vector_store %arg3[%c0_13, %c0_14], %38 {strides = array<i32>} : memref<16x32xf32, #tpu.memory_space<vmem>>, vector<16x32xf32>,
    return
  }
  func.func @transform_0(%arg0: i32) -> (i32, i32) {
    %c0_i32 = arith.constant 0 : i32
    %c0_i32_0 = arith.constant 0 : i32
    return %arg0, %c0_i32 : i32, i32
  }
  func.func @transform_1(%arg0: i32) -> (i32, i32) {
    %c0_i32 = arith.constant 0 : i32
    %c0_i32_0 = arith.constant 0 : i32
    return %arg0, %c0_i32 : i32, i32
  }
  func.func @transform_2(%arg0: i32) -> (i32, i32) {
    %c0_i32 = arith.constant 0 : i32
    %c0_i32_0 = arith.constant 0 : i32
    return %arg0, %c0_i32 : i32, i32
  }
}

</mosaic_0001>

<bundles_post_ra>
// kernel: tpu_custom_call.1
= control target key start
LH: loop header
LB: loop body
LE: loop exit
PB: predicated region body
PF: predicated region fallthrough
CT: control target
= control target key end

     0   :  { %s380_s9 = smov 0   ;;  %s415_s0 = inlined_call_operand.vmem [shape: f32[64,32], index: 0, kind: input, shape index: {}]   ;;  %s416_s1 = inlined_call_operand.vmem [shape: f32[64,32], index: 1, kind: input, shape index: {}]   ;;  %s417_s2 = inlined_call_operand.vmem [shape: f32[64,32], index: 2, kind: output, shape index: {}]  }
   0x1 LB: > { %s312_s10 = sadd.s32 4294967295, %s363_s9   ;;  %p316_p0 = scmp.ge.s32.totalorder %s363_s9, 1  ;;  %s363_s9 = sphi %s380_s9, %s12_s9  }
   0x2   : > { %p124_p1 = scmp.lt.s32.totalorder %s363_s9, 5 }
   0x4   : > { %p125_p2 = pnand %p316_p0, %p124_p1 }
   0x5   : > { %s317_s11 = sshll.u32 (!%p125_p2), %s312_s10, 1 }
   0x6   : > { %128 = sbr.rel (%p125_p2) target bundleno = 650 (0x28a), region = 28  ;;  %p152_p3 = scmp.lt.s32.totalorder (!%p125_p2), %s317_s11, 7 }
   0xb   : > { %s419_s11 = smov (!%p152_p3, %s317_s11), 7  ;;  %vm171_vm0 = vcmask 261120  }
   0xc   : > { %s388_s12 = sshll.u32 %s419_s11, 3 }
   0xd   : > { %s155_s15 = scalar_lea.vmem %s415_s0, %s388_s12  ;;  %s161_s18 = scalar_lea.vmem %s416_s1, %s388_s12 }
   0xe   : > { %v169_v0 = vld [vmem:[%s155_s15] sm:$0xff]  ;;  %v170_v2 = vld [vmem:[%s155_s15 + $0x8] sm:$0xff]  ;;  %s167_s21 = scalar_lea.vmem %s417_s2, %s388_s12 }
   0xf   : > { %v172_v1 = vsel %vm171_vm0, %v169_v0, -inf  ;;  %v175_v3 = vsel %vm171_vm0, %v170_v2, -inf  ;;  %v196_v14 = vld [vmem:[%s161_s18] sm:$0xff]  ;;  %v197_v16 = vld [vmem:[%s161_s18 + $0x8] sm:$0xff] }
  0x10   : > { %173 = vmax.xlane.f32.xlu0 %v172_v1  ;;  %v198_v15 = vadd.f32 1e-25, %v196_v14  ;;  %v199_v17 = vadd.f32 1e-25, %v197_v16 }
  0x12   : > { %v200_v18 = vmax.f32 %v198_v15, 1e-25  ;;  %v201_v19 = vmax.f32 %v199_v17, 1e-25 }
  0x14   : > { %176 = vmax.xlane.f32.xlu0 %v175_v3  ;;  %v202_v20 = vmin.f32 %v200_v18, 0.9999999  ;;  %v203_v21 = vmin.f32 %v201_v19, 0.9999999 }
  0x99   : > { %v174_v4 = vpop.xlane.xlu0 %173 }
  0x9a   : > { %v178_v5 = vsub.f32 %v169_v0, %v174_v4 }
  0x9c   : > { %v180_v6 = vmul.f32 1.442695, %v178_v5 }
  0x9d   : > { %v177_v7 = vpop.xlane.xlu0 %176 }
  0x9e   : > { %333 = vpow2.f32 %v180_v6  ;;  %v179_v8 = vsub.f32 %v170_v2, %v177_v7 }
  0xa0   : > { %v182_v9 = vmul.f32 1.442695, %v179_v8 }
  0xa2   : > { %335 = vpow2.f32 %v182_v9 }
  0xa3   : > { %337 = vlog2.f32 %v202_v20 }
  0xa4   : > { %339 = vlog2.f32 %v203_v21 }
  0xab   : > { %v334_v10 = vpop.eup %333 }
  0xac   : > { %v184_v11 = vsel %vm171_vm0, %v334_v10, 0.0 }
  0xad   : > { %185 = vadd.xlane.f32.xlu1 %v184_v11 }
  0xaf   : > { %v336_v12 = vpop.eup %335 }
  0xb0   : > { %v187_v13 = vsel %vm171_vm0, %v336_v12, 0.0  ;;  %v338_v22 = vpop.eup %337 }
  0xb1   : > { %188 = vadd.xlane.f32.xlu1 %v187_v13  ;;  %v205_v23 = vmul.f32 0.6931472, %v338_v22  ;;  %v340_v24 = vpop.eup %339 }
  0xb2   : > { %v207_v26 = vmul.f32 0.6931472, %v340_v24 }
  0xb3   : > { %v208_v25 = vsub.f32 0.0, %v205_v23 }
  0xb4   : > { %v209_v27 = vsub.f32 0.0, %v207_v26 }
  0xb5   : > { %341 = vlog2.f32 %v208_v25 }
  0xb6   : > { %343 = vlog2.f32 %v209_v27 }
  0xc2   : > { %v342_v30 = vpop.eup %341 }
  0xc3   : > { %v211_v31 = vmul.f32 0.6931472, %v342_v30  ;;  %v344_v32 = vpop.eup %343 }
  0xc4   : > { %v213_v36 = vmul.f32 0.6931472, %v344_v32 }
  0xc5   : > { %v214_v35 = vsub.f32 0.0, %v211_v31 }
  0xc6   : > { %v215_v41 = vsub.f32 0.0, %v213_v36 }
 0x136   : > { %v186_v28 = vpop.xlane.xlu1 %185 }
 0x137   : > { %345 = vlog2.f32 %v186_v28 }
 0x13a   : > { %v189_v29 = vpop.xlane.xlu1 %188 }
 0x13b   : > { %347 = vlog2.f32 %v189_v29 }
 0x144   : > { %v346_v33 = vpop.eup %345 }
 0x145   : > { %v191_v34 = vmul.f32 0.6931472, %v346_v33 }
 0x147   : > { %v194_v37 = vsub.f32 %v178_v5, %v191_v34 }
 0x148   : > { %v348_v38 = vpop.eup %347 }
 0x149   : > { %v193_v39 = vmul.f32 0.6931472, %v348_v38  ;;  %v216_v40 = vadd.f32 %v214_v35, %v194_v37 }
 0x14b   : > { %v218_v42 = vmul.f32 10.0, %v216_v40  ;;  %v195_v43 = vsub.f32 %v179_v8, %v193_v39 }
 0x14d   : > { %v220_v44 = vsel %vm171_vm0, %v218_v42, -inf  ;;  %v217_v45 = vadd.f32 %v215_v41, %v195_v43 }
 0x14e   : > { %221 = vmax.xlane.f32.xlu0 %v220_v44 }
 0x14f   : > { %v219_v46 = vmul.f32 10.0, %v217_v45 }
 0x151   : > { %v223_v47 = vsel %vm171_vm0, %v219_v46, -inf }
 0x152   : > { %224 = vmax.xlane.f32.xlu1 %v223_v47 }
 0x1d7   : > { %v222_v48 = vpop.xlane.xlu0 %221 }
 0x1d8   : > { %v226_v49 = vsub.f32 %v218_v42, %v222_v48 }
 0x1da   : > { %v228_v50 = vmul.f32 1.442695, %v226_v49 }
 0x1db   : > { %v225_v51 = vpop.xlane.xlu1 %224 }
 0x1dc   : > { %349 = vpow2.f32 %v228_v50  ;;  %v227_v52 = vsub.f32 %v219_v46, %v225_v51 }
 0x1de   : > { %v230_v53 = vmul.f32 1.442695, %v227_v52 }
 0x1e0   : > { %351 = vpow2.f32 %v230_v53 }
 0x1e9   : > { %v350_v54 = vpop.eup %349 }
 0x1ea   : > { %v232_v55 = vsel %vm171_vm0, %v350_v54, 0.0 }
 0x1eb   : > { %233 = vadd.xlane.f32.xlu0 %v232_v55 }
 0x1ed   : > { %v352_v56 = vpop.eup %351 }
 0x1ee   : > { %v235_v57 = vsel %vm171_vm0, %v352_v56, 0.0 }
 0x1ef   : > { %236 = vadd.xlane.f32.xlu1 %v235_v57 }
 0x274   : > { %v234_v58 = vpop.xlane.xlu0 %233 }
 0x275   : > { %353 = vrcp.f32 %v234_v58 }
 0x278   : > { %v237_v59 = vpop.xlane.xlu1 %236 }
 0x279   : > { %355 = vrcp.f32 %v237_v59 }
 0x282   : > { %v354_v60 = vpop.eup %353 }
 0x283   : > { %v240_v61 = vmul.f32 %v354_v60, %v350_v54 }
 0x285   : > { %242 = vst.msk [vmem:[%s167_s21] sm:$0xff] %vm171_vm0, %v240_v61 }
 0x286   : > { %v356_v62 = vpop.eup %355 }
 0x287   : > { %v241_v63 = vmul.f32 %v356_v62, %v352_v56 }
 0x289   : > { %243 = vst.msk [vmem:[%s167_s21 + $0x8] sm:$0xff] %vm171_vm0, %v241_v63 }
 0x28a PF: > { %s12_s9 = sadd.s32 1, %s363_s9  }
 0x28b   : > { %p9_p4 = scmp.ge.s32.totalorder %s12_s9, 6  }
 0x28d   :  { %11 = sbr.rel (!%p9_p4) target bundleno = 1 (0x1), region = 61 }

</bundles_post_ra>
